<compile_context>
chip_gen: v6e
topology: v6e:2x2x1
jax: 0.10.0
libtpu: 0.0.40
codegen_flags: <defaults>
</compile_context>

<pallas_src>
import functools

import jax
import jax.numpy as jnp
from jax.experimental import pallas as pl
from jax.experimental.pallas import tpu as pltpu


# ----------------------------------------------------------------------------
# Device / tiling helpers
# ----------------------------------------------------------------------------
_SMALL_PROBLEM_BYTES = 1 << 20      # below this, forcing a batch split is silly
_XLA_FALLBACK_BYTES = 256 * 1024    # below this, skip Pallas entirely


def _vmem_capacity_bytes():
    try:
        return int(pltpu.get_tpu_info().vmem_capacity_bytes)
    except Exception:
        return 64 * 1024 * 1024     # safe floor (v7x per-TC capacity)


def _block_budget_bytes(capacity):
    # (in + out) bytes allowed per block; double buffering roughly doubles the
    # resident footprint.  ~8 MiB on v7x (64 MiB VMEM), ~16 MiB on v5e/v6e.
    return max(4 << 20, min(capacity // 8, 16 << 20))


def _vmem_limit(block_bytes, capacity):
    # 2x for double buffering + 1 MiB headroom; clamp to device capacity.
    want = 2 * block_bytes + (1 << 20)
    return int(min(max(want, 32 << 20), capacity - (4 << 20)))


def _is_multi_tc_chip():
    # TODO(synk): replace with a real TensorCore-count query once exposed.
    try:
        return "v7" in jax.devices()[0].device_kind.lower()
    except Exception:
        return False


def _sublane_multiple(dtype):
    # Sub-32-bit dtypes pack along sublanes: f32 -> 8, bf16 -> 16, int8 -> 32.
    return max(8, 32 // max(jnp.dtype(dtype).itemsize, 1))


def _cal_length(input_length, kernel_size, stride, dilation):
    return (input_length // stride * stride
            + (kernel_size - 1) * dilation - input_length)


def _split_pad(p):
    """F.pad semantics: negative pad means crop. Returns (crop, pad) >= 0."""
    return (max(-p, 0), max(p, 0))


def _legal_channel_tiles(c, multiple_of):
    # Second-to-last block dim: multiple of the sublane packing, or full dim.
    return [d for d in range(1, c + 1)
            if c % d == 0 and (d % multiple_of == 0 or d == c)]


def _pick_channel_tile(c, unit_bytes, budget, *, multiple_of=1):
    legal = _legal_channel_tiles(c, multiple_of)
    fits = [d for d in legal if d * unit_bytes <= budget]
    return max(fits) if fits else min(legal)


def _pick_batch_tile(n, unit_bytes, budget):
    fits = [d for d in range(1, n + 1)
            if n % d == 0 and d * unit_bytes <= budget]
    n_tile = max(fits) if fits else 1
    # Only force >=2 grid blocks on multi-TensorCore chips (v7x); on 1-TC parts
    # the grid is a sequential loop and the split adds ~0.35us/step for nothing.
    if (n_tile == n and n > 1 and n * unit_bytes > _SMALL_PROBLEM_BYTES
            and _is_multi_tc_chip()):
        proper = [d for d in fits if d < n]
        n_tile = max(proper) if proper else 1
    return n_tile


# ----------------------------------------------------------------------------
# Kernels: build the padded block in vregs, single full-block lane-dense store.
# ----------------------------------------------------------------------------
def _cat_pad(x, axis, before, after):
    """Concatenate zero slabs of static sizes `before`/`after` around x."""
    parts = []
    if before:
        s = list(x.shape); s[axis] = before
        parts.append(jnp.zeros(s, x.dtype))
    parts.append(x)
    if after:
        s = list(x.shape); s[axis] = after
        parts.append(jnp.zeros(s, x.dtype))
    return parts[0] if len(parts) == 1 else jnp.concatenate(parts, axis=axis)


def _pad_kernel_3d_full(x_ref, o_ref, *, pad_left, pad_right):
    # x_ref: (Nt, Ct, T)   o_ref: (Nt, Ct, T + pad_left + pad_right)
    o_ref[...] = _cat_pad(x_ref[...], axis=-1, before=pad_left, after=pad_right)


def _pad_kernel_3d_tiled(x_ref, o_ref, carry_ref, *, pad_left, t_blk, t_valid):
    # Grid axis 2 tiles the OUTPUT time axis ("arbitrary", iterated in order).
    # x_ref/o_ref: (1, Ct, t_blk).  carry_ref holds the last `pad_left` input
    # columns of the previous block, so every input element is read once and
    # interior blocks are a pure copy.  Right-pad / ragged-tail garbage is
    # zeroed with a single select before one unmasked full-block store.
    k = pl.program_id(2)
    cur = x_ref[...]
    if pad_left:
        @pl.when(k == 0)
        def _():
            carry_ref[...] = jnp.zeros_like(carry_ref)
        shifted = jnp.concatenate(
            [carry_ref[...], cur[..., : t_blk - pad_left]], axis=-1)
    else:
        shifted = cur
    idx = k * t_blk + jax.lax.broadcasted_iota(jnp.int32, shifted.shape, 2)
    o_ref[...] = jnp.where(idx < t_valid, shifted, jnp.zeros_like(shifted))
    if pad_left:
        carry_ref[...] = cur[..., t_blk - pad_left:]


def _pad_kernel_4d_flat(x_ref, o_ref, *, h, w, pad_top, pad_bottom,
                        pad_left, pad_right):
    # x_ref: (Nt, Ct, H*W)   o_ref: (Nt, Ct, H_out*W_out)  -- lane-dense.
    # Build the flat padded image row-by-row with static lane slices and one
    # big lane-axis concat (adjacent zero runs are merged), then store once.
    # TODO(synk): for very large H this unrolls O(H) concat pieces; an H-tiled
    # grid axis would bound both VMEM and code size.
    x = x_ref[...]
    n_t, c_t = x.shape[0], x.shape[1]
    w_out = w + pad_left + pad_right

    def zeros(nlanes):
        return jnp.zeros((n_t, c_t, nlanes), x.dtype)

    pieces = []
    lead = pad_top * w_out + pad_left
    if lead:
        pieces.append(zeros(lead))
    gap = pad_right + pad_left
    for row in range(h):
        pieces.append(x[..., row * w:(row + 1) * w])
        if row + 1 < h and gap:
            pieces.append(zeros(gap))
    tail = pad_right + pad_bottom * w_out
    if tail:
        pieces.append(zeros(tail))
    o_ref[...] = (pieces[0] if len(pieces) == 1
                  else jnp.concatenate(pieces, axis=-1))


# ----------------------------------------------------------------------------
# Wrapper (pad arithmetic identical to the PyTorch module)
# ----------------------------------------------------------------------------
def same_pad(x, *, kernel_size, causal, stride=1, dilation=1,
             padding_mode="zeros", channel_last=False,
             force_pallas=False, t_block=None):
    """Pallas implementation of SamePad.forward (padding_mode='zeros')."""
    del channel_last  # stored by the torch module but unused in its forward
    if padding_mode != "zeros":
        # TODO(synk): reflect / replicate / circular need an in-kernel index
        # remap (gather); only 'zeros' is implemented.
        raise NotImplementedError("only padding_mode='zeros' is implemented")

    cap = _vmem_capacity_bytes()
    budget = _block_budget_bytes(cap)
    itemsize = jnp.dtype(x.dtype).itemsize
    ndim = x.ndim

    if ndim == 3:
        n, c, t = x.shape
        all_pad = _cal_length(t, kernel_size, stride, dilation)
        pad_l, pad_r = (all_pad, 0) if causal else (all_pad // 2, all_pad // 2)
        (crop_l, pad_l), (crop_r, pad_r) = _split_pad(pad_l), _split_pad(pad_r)
        if crop_l or crop_r:                    # negative pad == crop (F.pad)
            x = x[:, :, crop_l:t - crop_r]
            t = x.shape[-1]
        if pad_l == 0 and pad_r == 0:
            return x
        t_out = t + pad_l + pad_r

        total_bytes = n * c * (t + t_out) * itemsize
        if not force_pallas and total_bytes <= _XLA_FALLBACK_BYTES:
            # Tiny problem: launch overhead dominates; let XLA fuse the pad.
            return jnp.pad(x, ((0, 0), (0, 0), (pad_l, pad_r)))

        sub = _sublane_multiple(x.dtype)
        per_nc = (t + t_out) * itemsize

        # Decide between the full-T path and the T-tiled streaming path.
        t_blk = None
        if t_block is not None:
            t_blk = max(128, -(-int(t_block) // 128) * 128)
        elif min(_legal_channel_tiles(c, sub)) * per_nc > budget:
            t_blk = 512
        if t_blk is not None:
            while t_blk <= pad_l:               # carry must hold pad_l columns
                t_blk += 128
            if t_blk >= t_out:                  # tiling would be a single block
                t_blk = None

        if t_blk is not None:
            # ---- T-tiled path (long sequences) ----
            unit = 3 * t_blk * itemsize
            c_tile = _pick_channel_tile(c, unit, budget, multiple_of=sub)
            n_in_blocks = pl.cdiv(t, t_blk)
            block_bytes = c_tile * 2 * t_blk * itemsize
            kernel = functools.partial(_pad_kernel_3d_tiled, pad_left=pad_l,
                                       t_blk=t_blk, t_valid=pad_l + t)
            return pl.pallas_call(
                kernel,
                out_shape=jax.ShapeDtypeStruct((n, c, t_out), x.dtype),
                grid=(n, c // c_tile, pl.cdiv(t_out, t_blk)),
                in_specs=[pl.BlockSpec(
                    (1, c_tile, t_blk),
                    lambda i, j, k: (i, j, jnp.minimum(k, n_in_blocks - 1)))],
                out_specs=pl.BlockSpec((1, c_tile, t_blk),
                                       lambda i, j, k: (i, j, k)),
                scratch_shapes=[pltpu.VMEM((1, c_tile, max(pad_l, 1)), x.dtype)],
                compiler_params=pltpu.CompilerParams(
                    dimension_semantics=("parallel", "parallel", "arbitrary"),
                    vmem_limit_bytes=_vmem_limit(block_bytes, cap)),
            )(x)

        # ---- full-T path (T fits comfortably per block) ----
        c_tile = _pick_channel_tile(c, per_nc, budget, multiple_of=sub)
        n_tile = (_pick_batch_tile(n, c_tile * per_nc, budget)
                  if c_tile == c else 1)
        block_bytes = n_tile * c_tile * per_nc
        kernel = functools.partial(_pad_kernel_3d_full,
                                   pad_left=pad_l, pad_right=pad_r)
        return pl.pallas_call(
            kernel,
            out_shape=jax.ShapeDtypeStruct((n, c, t_out), x.dtype),
            grid=(n // n_tile, c // c_tile),
            in_specs=[pl.BlockSpec((n_tile, c_tile, t), lambda i, j: (i, j, 0))],
            out_specs=pl.BlockSpec((n_tile, c_tile, t_out),
                                   lambda i, j: (i, j, 0)),
            compiler_params=pltpu.CompilerParams(
                dimension_semantics=("parallel", "parallel"),
                vmem_limit_bytes=_vmem_limit(block_bytes, cap)),
        )(x)

    elif ndim == 4:
        n, c, h, w = x.shape
        all_pad1 = _cal_length(h, kernel_size, stride, dilation)
        all_pad2 = _cal_length(w, kernel_size, stride, dilation)
        if causal:
            pad_t, pad_b, pad_l, pad_r = all_pad1, 0, all_pad2, 0
        else:
            pad_t = pad_b = all_pad1 // 2
            pad_l = pad_r = all_pad2 // 2
        (crop_t, pad_t), (crop_b, pad_b) = _split_pad(pad_t), _split_pad(pad_b)
        (crop_l, pad_l), (crop_r, pad_r) = _split_pad(pad_l), _split_pad(pad_r)
        if crop_t or crop_b or crop_l or crop_r:
            x = x[:, :, crop_t:h - crop_b, crop_l:w - crop_r]
            h, w = x.shape[-2], x.shape[-1]
        if pad_t == 0 and pad_b == 0 and pad_l == 0 and pad_r == 0:
            return x
        h_out, w_out = h + pad_t + pad_b, w + pad_l + pad_r

        total_bytes = n * c * (h * w + h_out * w_out) * itemsize
        if not force_pallas and total_bytes <= _XLA_FALLBACK_BYTES:
            return jnp.pad(x, ((0, 0), (0, 0), (pad_t, pad_b), (pad_l, pad_r)))

        # Lane-dense presentation: flatten H*W outside (free for contiguous
        # inputs), build the flat padded row in-kernel, reshape back after.
        x_flat = x.reshape(n, c, h * w)
        sub = _sublane_multiple(x.dtype)
        per_nc = (h * w + h_out * w_out) * itemsize
        c_tile = _pick_channel_tile(c, per_nc, budget, multiple_of=sub)
        n_tile = (_pick_batch_tile(n, c_tile * per_nc, budget)
                  if c_tile == c else 1)
        block_bytes = n_tile * c_tile * per_nc

        kernel = functools.partial(_pad_kernel_4d_flat, h=h, w=w,
                                   pad_top=pad_t, pad_bottom=pad_b,
                                   pad_left=pad_l, pad_right=pad_r)
        out_flat = pl.pallas_call(
            kernel,
            out_shape=jax.ShapeDtypeStruct((n, c, h_out * w_out), x.dtype),
            grid=(n // n_tile, c // c_tile),
            in_specs=[pl.BlockSpec((n_tile, c_tile, h * w),
                                   lambda i, j: (i, j, 0))],
            out_specs=pl.BlockSpec((n_tile, c_tile, h_out * w_out),
                                   lambda i, j: (i, j, 0)),
            compiler_params=pltpu.CompilerParams(
                dimension_semantics=("parallel", "parallel"),
                vmem_limit_bytes=_vmem_limit(block_bytes, cap)),
        )(x_flat)
        return out_flat.reshape(n, c, h_out, w_out)

    else:
        raise RuntimeError(f"input is {ndim}D and not supported")


# ----------------------------------------------------------------------------
# Test
# ----------------------------------------------------------------------------
if __name__ == "__main__":
    key = jax.random.PRNGKey(0)
    k1, k2, k3, k4 = jax.random.split(key, 4)

    # 4D NCHW, non-causal "same" (kernel_size=3 -> pad 1 each side); flat path.
    x4 = jax.random.normal(k1, (2, 4, 16, 16), dtype=jnp.float32)
    y4 = same_pad(x4, kernel_size=3, causal=False, force_pallas=True)
    jax.block_until_ready(y4)
    assert y4.shape == (2, 4, 18, 18)
    assert jnp.array_equal(y4, jnp.pad(x4, ((0, 0), (0, 0), (1, 1), (1, 1))))

    # 4D NCHW, causal (kernel_size=5 -> pad 4 on top/left only).
    x4c = jax.random.normal(k2, (2, 4, 16, 16), dtype=jnp.float32)
    y4c = same_pad(x4c, kernel_size=5, causal=True, force_pallas=True)
    jax.block_until_ready(y4c)
    assert y4c.shape == (2, 4, 20, 20)
    assert jnp.array_equal(y4c, jnp.pad(x4c, ((0, 0), (0, 0), (4, 0), (4, 0))))

    # 3D (N, C, T), causal (kernel_size=3 -> pad (2, 0)); full-T path.
    x3 = jax.random.normal(k3, (2, 8, 64), dtype=jnp.float32)
    y3 = same_pad(x3, kernel_size=3, causal=True, force_pallas=True)
    jax.block_until_ready(y3)
    assert y3.shape == (2, 8, 66)
    assert jnp.array_equal(y3, jnp.pad(x3, ((0, 0), (0, 0), (2, 0))))

    # 3D T-tiled path (carry across 128-lane T blocks, ragged last block).
    x3t = jax.random.normal(k4, (2, 8, 640), dtype=jnp.float32)
    y3t = same_pad(x3t, kernel_size=3, causal=True, force_pallas=True,
                   t_block=128)
    jax.block_until_ready(y3t)
    assert y3t.shape == (2, 8, 642)
    assert jnp.array_equal(y3t, jnp.pad(x3t, ((0, 0), (0, 0), (2, 0))))

    # 3D T-tiled, non-causal (exercises the right-pad zero mask).
    y3n = same_pad(x3t, kernel_size=5, causal=False, force_pallas=True,
                   t_block=128)
    jax.block_until_ready(y3n)
    assert y3n.shape == (2, 8, 644)
    assert jnp.array_equal(y3n, jnp.pad(x3t, ((0, 0), (0, 0), (2, 2))))

    # Tiny-input XLA fallback path keeps semantics (no Pallas launch).
    x_small = jax.random.normal(k1, (1, 2, 8), dtype=jnp.float32)
    y_small = same_pad(x_small, kernel_size=3, causal=False)
    jax.block_until_ready(y_small)
    assert jnp.array_equal(y_small, jnp.pad(x_small, ((0, 0), (0, 0), (1, 1))))

    print("KERNEL_OK")
</pallas_src>

<mosaic_0001>
module attributes {stable_mosaic.version = 11 : i64} {
  func.func @_pad_kernel_4d_flat(%arg0: i32, %arg1: i32, %arg2: memref<2x4x256xf32, #tpu.memory_space<vmem>>, %arg3: memref<2x4x324xf32, #tpu.memory_space<vmem>>) attributes {dimension_semantics = [#tpu.dimension_semantics<parallel>, #tpu.dimension_semantics<parallel>], iteration_bounds = array<i64: 1, 1>, scalar_prefetch = 0 : i64, scratch_operands = 0 : i64, tpu.core_type = #tpu.core_type<tc>, window_params = [{transform_indices = @transform_0, window_bounds = array<i64: 2, 4, 256>}, {transform_indices = @transform_1, window_bounds = array<i64: 2, 4, 324>}]} {
    %c0 = arith.constant 0 : index
    %c0_0 = arith.constant 0 : index
    %c0_1 = arith.constant 0 : index
    %0 = vector.load %arg2[%c0, %c0_0, %c0_1] : memref<2x4x256xf32, #tpu.memory_space<vmem>>, vector<2x4x256xf32>
    %cst = arith.constant 0.000000e+00 : f32
    %1 = vector.broadcast %cst : f32 to vector<2x4x19xf32>
    %2 = vector.extract_strided_slice %0 {offsets = [0, 0, 0], sizes = [2, 4, 16], strides = [1, 1, 1]} : vector<2x4x256xf32> to vector<2x4x16xf32>
    %cst_2 = arith.constant 0.000000e+00 : f32
    %3 = vector.broadcast %cst_2 : f32 to vector<2x4x2xf32>
    %4 = vector.extract_strided_slice %0 {offsets = [0, 0, 16], sizes = [2, 4, 16], strides = [1, 1, 1]} : vector<2x4x256xf32> to vector<2x4x16xf32>
    %cst_3 = arith.constant 0.000000e+00 : f32
    %5 = vector.broadcast %cst_3 : f32 to vector<2x4x2xf32>
    %6 = vector.extract_strided_slice %0 {offsets = [0, 0, 32], sizes = [2, 4, 16], strides = [1, 1, 1]} : vector<2x4x256xf32> to vector<2x4x16xf32>
    %cst_4 = arith.constant 0.000000e+00 : f32
    %7 = vector.broadcast %cst_4 : f32 to vector<2x4x2xf32>
    %8 = vector.extract_strided_slice %0 {offsets = [0, 0, 48], sizes = [2, 4, 16], strides = [1, 1, 1]} : vector<2x4x256xf32> to vector<2x4x16xf32>
    %cst_5 = arith.constant 0.000000e+00 : f32
    %9 = vector.broadcast %cst_5 : f32 to vector<2x4x2xf32>
    %10 = vector.extract_strided_slice %0 {offsets = [0, 0, 64], sizes = [2, 4, 16], strides = [1, 1, 1]} : vector<2x4x256xf32> to vector<2x4x16xf32>
    %cst_6 = arith.constant 0.000000e+00 : f32
    %11 = vector.broadcast %cst_6 : f32 to vector<2x4x2xf32>
    %12 = vector.extract_strided_slice %0 {offsets = [0, 0, 80], sizes = [2, 4, 16], strides = [1, 1, 1]} : vector<2x4x256xf32> to vector<2x4x16xf32>
    %cst_7 = arith.constant 0.000000e+00 : f32
    %13 = vector.broadcast %cst_7 : f32 to vector<2x4x2xf32>
    %14 = vector.extract_strided_slice %0 {offsets = [0, 0, 96], sizes = [2, 4, 16], strides = [1, 1, 1]} : vector<2x4x256xf32> to vector<2x4x16xf32>
    %cst_8 = arith.constant 0.000000e+00 : f32
    %15 = vector.broadcast %cst_8 : f32 to vector<2x4x2xf32>
    %16 = vector.extract_strided_slice %0 {offsets = [0, 0, 112], sizes = [2, 4, 16], strides = [1, 1, 1]} : vector<2x4x256xf32> to vector<2x4x16xf32>
    %cst_9 = arith.constant 0.000000e+00 : f32
    %17 = vector.broadcast %cst_9 : f32 to vector<2x4x2xf32>
    %18 = vector.extract_strided_slice %0 {offsets = [0, 0, 128], sizes = [2, 4, 16], strides = [1, 1, 1]} : vector<2x4x256xf32> to vector<2x4x16xf32>
    %cst_10 = arith.constant 0.000000e+00 : f32
    %19 = vector.broadcast %cst_10 : f32 to vector<2x4x2xf32>
    %20 = vector.extract_strided_slice %0 {offsets = [0, 0, 144], sizes = [2, 4, 16], strides = [1, 1, 1]} : vector<2x4x256xf32> to vector<2x4x16xf32>
    %cst_11 = arith.constant 0.000000e+00 : f32
    %21 = vector.broadcast %cst_11 : f32 to vector<2x4x2xf32>
    %22 = vector.extract_strided_slice %0 {offsets = [0, 0, 160], sizes = [2, 4, 16], strides = [1, 1, 1]} : vector<2x4x256xf32> to vector<2x4x16xf32>
    %cst_12 = arith.constant 0.000000e+00 : f32
    %23 = vector.broadcast %cst_12 : f32 to vector<2x4x2xf32>
    %24 = vector.extract_strided_slice %0 {offsets = [0, 0, 176], sizes = [2, 4, 16], strides = [1, 1, 1]} : vector<2x4x256xf32> to vector<2x4x16xf32>
    %cst_13 = arith.constant 0.000000e+00 : f32
    %25 = vector.broadcast %cst_13 : f32 to vector<2x4x2xf32>
    %26 = vector.extract_strided_slice %0 {offsets = [0, 0, 192], sizes = [2, 4, 16], strides = [1, 1, 1]} : vector<2x4x256xf32> to vector<2x4x16xf32>
    %cst_14 = arith.constant 0.000000e+00 : f32
    %27 = vector.broadcast %cst_14 : f32 to vector<2x4x2xf32>
    %28 = vector.extract_strided_slice %0 {offsets = [0, 0, 208], sizes = [2, 4, 16], strides = [1, 1, 1]} : vector<2x4x256xf32> to vector<2x4x16xf32>
    %cst_15 = arith.constant 0.000000e+00 : f32
    %29 = vector.broadcast %cst_15 : f32 to vector<2x4x2xf32>
    %30 = vector.extract_strided_slice %0 {offsets = [0, 0, 224], sizes = [2, 4, 16], strides = [1, 1, 1]} : vector<2x4x256xf32> to vector<2x4x16xf32>
    %cst_16 = arith.constant 0.000000e+00 : f32
    %31 = vector.broadcast %cst_16 : f32 to vector<2x4x2xf32>
    %32 = vector.extract_strided_slice %0 {offsets = [0, 0, 240], sizes = [2, 4, 16], strides = [1, 1, 1]} : vector<2x4x256xf32> to vector<2x4x16xf32>
    %cst_17 = arith.constant 0.000000e+00 : f32
    %33 = vector.broadcast %cst_17 : f32 to vector<2x4x19xf32>
    %34 = tpu.concatenate %1, %2, %3, %4, %5, %6, %7, %8, %9, %10, %11, %12, %13, %14, %15, %16 in 2 : vector<2x4x19xf32>, vector<2x4x16xf32>, vector<2x4x2xf32>, vector<2x4x16xf32>, vector<2x4x2xf32>, vector<2x4x16xf32>, vector<2x4x2xf32>, vector<2x4x16xf32>, vector<2x4x2xf32>, vector<2x4x16xf32>, vector<2x4x2xf32>, vector<2x4x16xf32>, vector<2x4x2xf32>, vector<2x4x16xf32>, vector<2x4x2xf32>, vector<2x4x16xf32> -> vector<2x4x161xf32>
    %35 = tpu.concatenate %17, %18, %19, %20, %21, %22, %23, %24, %25, %26, %27, %28, %29, %30, %31, %32 in 2 : vector<2x4x2xf32>, vector<2x4x16xf32>, vector<2x4x2xf32>, vector<2x4x16xf32>, vector<2x4x2xf32>, vector<2x4x16xf32>, vector<2x4x2xf32>, vector<2x4x16xf32>, vector<2x4x2xf32>, vector<2x4x16xf32>, vector<2x4x2xf32>, vector<2x4x16xf32>, vector<2x4x2xf32>, vector<2x4x16xf32>, vector<2x4x2xf32>, vector<2x4x16xf32> -> vector<2x4x144xf32>
    %36 = tpu.concatenate %34, %35, %33 in 2 : vector<2x4x161xf32>, vector<2x4x144xf32>, vector<2x4x19xf32> -> vector<2x4x324xf32>
    %c0_18 = arith.constant 0 : index
    %c0_19 = arith.constant 0 : index
    %c0_20 = arith.constant 0 : index
    %37 = vector.load %arg3[%c0_18, %c0_19, %c0_20] : memref<2x4x324xf32, #tpu.memory_space<vmem>>, vector<2x4x324xf32>
    tpu.vector_store %arg3[%c0_18, %c0_19, %c0_20], %36 {strides = array<i32>} : memref<2x4x324xf32, #tpu.memory_space<vmem>>, vector<2x4x324xf32>,
    return
  }
  func.func @transform_0(%arg0: i32, %arg1: i32) -> (i32, i32, i32) {
    %c0_i32 = arith.constant 0 : i32
    %c0_i32_0 = arith.constant 0 : i32
    return %arg0, %arg1, %c0_i32 : i32, i32, i32
  }
  func.func @transform_1(%arg0: i32, %arg1: i32) -> (i32, i32, i32) {
    %c0_i32 = arith.constant 0 : i32
    %c0_i32_0 = arith.constant 0 : i32
    return %arg0, %arg1, %c0_i32 : i32, i32, i32
  }
}

</mosaic_0001>

<bundles_post_ra>
// kernel: tpu_custom_call.1
= control target key start
LH: loop header
LB: loop body
LE: loop exit
PB: predicated region body
PF: predicated region fallthrough
CT: control target
= control target key end

     0   :  { %6 = vsyncpa [#allocation3], 0  ;;  %s377_s0 = inlined_call_operand.hbm [shape: f32[2,4,256], index: 0, kind: input, shape index: {}]   ;;  %s378_s1 = inlined_call_operand.hbm [shape: f32[2,4,324], index: 1, kind: output, shape index: {}]  }
   0x1   :  { %7 = vsyncpa [#allocation4], 0  ;;  %s328_s6 = smov [#allocation2]  }
   0x2   :  { %s13_s7 = sshll.u32 %s328_s6, 4  ;;  %s14_s7 = int_to_ptr.vmem [resolvable:$true] %s13_s7 }
   0x3   :  { %s292_s8 = scalar_lea.vmem %s14_s7, 256  ;;  %p297_p1 = scmp.lt.s32.totalorder %s14_s7, %s14_s7 }
   0x4   :  { %p293_p0 = scmp.ne.s32.totalorder %s14_s7, %s292_s8  ;;  %p298_p2 = scmp.lt.s32.totalorder %s292_s8, %s292_s8 }
   0x6   :  { %p299_p3 = por %p298_p2, %p297_p1 }
   0x8   :  { %p300_p4 = pnand %p299_p3, %p293_p0 }
   0xa   :  { %303 = shalt.err (!%p300_p4)
}
   0xb   :  { %s329_s9 = smov 128   ;;  %s330_s10 = smov 8  }
   0xc   :  { %19 = dma.hbm_to_vmem [thread:$0]  %s377_s0, 256, %s14_s7, [#allocation3], %s329_s9, %s329_s9, %s330_s10  }
   0xd   :  { %324 = dma.done.wait [#allocation3], 256  }
   0xe   :  { %325 = vsyncadd [#allocation3], 4294967040  ;;  %v23_v0 = vld [vmem:[#allocation2] sm:$0xff]  ;;  %v24_v1 = vld [vmem:[#allocation2 + $0x8] sm:$0xff]  ;;  %s331_s13 = smov 4   ;;  %s332_s14 = smov 2  }
   0xf   :  { %v120_v2 = vcombine.high %v23_v0, %v23_v0  ;;  %v121_v3 = vcombine.high %v24_v1, %v24_v1  ;;  %s333_s15 = smov 6   ;;  %s334_s16 = smov 10   ;;  %vm168_vm0 = vcmask 15360   ;;  %vm171_vm1 = vcmask 146432  }
  0x10   :  { %s335_s0 = smov 12   ;;  %s336_s17 = smov 14   ;;  %vm174_vm2 = vcmask 162816   ;;  %vm177_vm3 = vcmask 293888   ;;  %vm180_vm4 = vcmask 310272   ;;  %vm183_vm5 = vcmask 441344  }
  0x11   :  { %128 = vrot.lane.b32.xlu1 %v120_v2, %s331_s13  ;;  %122 = vrot.lane.b32.xlu0 %v120_v2, %s332_s14  ;;  %s337_s18 = smov 16   ;;  %s338_s19 = smov 19   ;;  %vm186_vm6 = vcmask 457728   ;;  %vm189_vm7 = vcmask 588800   ;;  %vm192_vm8 = vcmask 605184   ;;  %vm195_vm9 = vcmask 736256  }
  0x12   :  { %s339_s20 = smov 21   ;;  %s340_s21 = smov 23   ;;  %vm198_vm10 = vcmask 752640   ;;  %vm201_vm11 = vcmask 883712   ;;  %vm204_vm12 = vcmask 900096   ;;  %vm207_vm13 = vcmask 1031168  }
  0x13   :  { %s341_s22 = smov 25   ;;  %s342_s23 = smov 27   ;;  %vm75_vm14 = vcmask 154624   ;;  %vm78_vm15 = vcmask 285696  }
  0x14   :  { %s343_s24 = smov 29   ;;  %s344_s25 = smov 31  }
  0x15   :  { %130 = vrot.lane.b32.xlu1 %v121_v3, %s331_s13  ;;  %124 = vrot.lane.b32.xlu0 %v121_v3, %s332_s14  ;;  %s345_s26 = smov 33   ;;  %s346_s27 = smov [#allocation5]  }
  0x16   :  { %s250_s28 = sshll.u32 %s346_s27, 4  ;;  %s251_s28 = int_to_ptr.vmem [resolvable:$true] %s250_s28 }
  0x17   :  { %s304_s29 = scalar_lea.vmem %s251_s28, 384  ;;  %p309_p6 = scmp.lt.s32.totalorder %s251_s28, %s251_s28 }
  0x18   :  { %p305_p5 = scmp.ne.s32.totalorder %s251_s28, %s304_s29  ;;  %p310_p7 = scmp.lt.s32.totalorder %s304_s29, %s304_s29 }
  0x19   :  { %136 = vrot.lane.b32.xlu1 %v121_v3, %s333_s15  ;;  %134 = vrot.lane.b32.xlu0 %v120_v2, %s333_s15 }
  0x1a   :  { %p311_p8 = por %p310_p7, %p309_p6 }
  0x1c   :  { %p312_p9 = pnand %p311_p8, %p305_p5 }
  0x1d   :  { %142 = vrot.lane.b32.xlu1 %v121_v3, %s330_s10  ;;  %140 = vrot.lane.b32.xlu0 %v120_v2, %s330_s10 }
  0x21   :  { %148 = vrot.lane.b32.xlu1 %v121_v3, %s334_s16  ;;  %146 = vrot.lane.b32.xlu0 %v120_v2, %s334_s16 }
  0x25   :  { %154 = vrot.lane.b32.xlu1 %v121_v3, %s335_s0  ;;  %152 = vrot.lane.b32.xlu0 %v120_v2, %s335_s0 }
  0x29   :  { %160 = vrot.lane.b32.xlu1 %v121_v3, %s336_s17  ;;  %158 = vrot.lane.b32.xlu0 %v120_v2, %s336_s17 }
  0x2d   :  { %166 = vrot.lane.b32.xlu1 %v121_v3, %s337_s18  ;;  %164 = vrot.lane.b32.xlu0 %v120_v2, %s337_s18 }
  0x31   :  { %29 = vrot.lane.b32.xlu1 %v24_v1, %s338_s19  ;;  %27 = vrot.lane.b32.xlu0 %v23_v0, %s338_s19 }
  0x35   :  { %35 = vrot.lane.b32.xlu1 %v24_v1, %s339_s20  ;;  %33 = vrot.lane.b32.xlu0 %v23_v0, %s339_s20 }
  0x39   :  { %41 = vrot.lane.b32.xlu1 %v24_v1, %s340_s21  ;;  %39 = vrot.lane.b32.xlu0 %v23_v0, %s340_s21 }
  0x3d   :  { %47 = vrot.lane.b32.xlu1 %v24_v1, %s341_s22  ;;  %45 = vrot.lane.b32.xlu0 %v23_v0, %s341_s22 }
  0x41   :  { %53 = vrot.lane.b32.xlu1 %v24_v1, %s342_s23  ;;  %51 = vrot.lane.b32.xlu0 %v23_v0, %s342_s23 }
  0x45   :  { %59 = vrot.lane.b32.xlu1 %v24_v1, %s343_s24  ;;  %57 = vrot.lane.b32.xlu0 %v23_v0, %s343_s24 }
  0x49   :  { %65 = vrot.lane.b32.xlu1 %v24_v1, %s344_s25  ;;  %63 = vrot.lane.b32.xlu0 %v23_v0, %s344_s25 }
  0x4d   :  { %71 = vrot.lane.b32.xlu1 %v24_v1, %s345_s26  ;;  %69 = vrot.lane.b32.xlu0 %v23_v0, %s345_s26 }
  0x83   :  { %v129_v4 = vpop.permute.xlu1 %128  ;;  %v123_v5 = vpop.permute.xlu0 %122 }
  0x84   :  { %v169_v6 = vsel %vm168_vm0, 0.0, %v123_v5 }
  0x85   :  { %v172_v7 = vsel %vm171_vm1, %v169_v6, 0.0 }
  0x86   :  { %v175_v10 = vsel %vm174_vm2, %v172_v7, %v129_v4 }
  0x87   :  { %v131_v8 = vpop.permute.xlu1 %130  ;;  %v125_v9 = vpop.permute.xlu0 %124  ;;  %v178_v16 = vsel %vm177_vm3, %v175_v10, 0.0 }
  0x88   :  { %v170_v11 = vsel %vm168_vm0, 0.0, %v125_v9  ;;  %vm81_vm0 = vcmask 302080  }
  0x89   :  { %v173_v12 = vsel %vm171_vm1, %v170_v11, 0.0  ;;  %vm84_vm1 = vcmask 433152  }
  0x8a   :  { %v176_v13 = vsel %vm174_vm2, %v173_v12, %v131_v8  ;;  %vm87_vm2 = vcmask 449536  }
  0x8b   :  { %v137_v14 = vpop.permute.xlu1 %136  ;;  %v179_v15 = vsel %vm177_vm3, %v176_v13, 0.0  ;;  %v135_v17 = vpop.permute.xlu0 %134  ;;  %vm90_vm3 = vcmask 580608  }
  0x8c   :  { %v182_v18 = vsel %vm180_vm4, %v179_v15, %v137_v14  ;;  %v181_v19 = vsel %vm180_vm4, %v178_v16, %v135_v17  ;;  %vm93_vm4 = vcmask 596992  }
  0x8d   :  { %v185_v20 = vsel %vm183_vm5, %v182_v18, 0.0  ;;  %v184_v21 = vsel %vm183_vm5, %v181_v19, 0.0  ;;  %vm96_vm5 = vcmask 728064  }
  0x8f   :  { %v143_v22 = vpop.permute.xlu1 %142  ;;  %v141_v23 = vpop.permute.xlu0 %140 }
  0x90   :  { %v188_v24 = vsel %vm186_vm6, %v185_v20, %v143_v22  ;;  %v187_v25 = vsel %vm186_vm6, %v184_v21, %v141_v23  ;;  %vm99_vm6 = vcmask 744448  }
  0x91   :  { %v191_v26 = vsel %vm189_vm7, %v188_v24, 0.0  ;;  %v190_v27 = vsel %vm189_vm7, %v187_v25, 0.0  ;;  %vm102_vm7 = vcmask 875520  }
  0x93   :  { %v149_v28 = vpop.permute.xlu1 %148  ;;  %v147_v29 = vpop.permute.xlu0 %146 }
  0x94   :  { %v194_v30 = vsel %vm192_vm8, %v191_v26, %v149_v28  ;;  %v193_v31 = vsel %vm192_vm8, %v190_v27, %v147_v29  ;;  %vm105_vm8 = vcmask 891904  }
  0x95   :  { %v197_v32 = vsel %vm195_vm9, %v194_v30, 0.0  ;;  %v196_v33 = vsel %vm195_vm9, %v193_v31, 0.0  ;;  %vm114_vm9 = vcmask 121856  }
  0x97   :  { %v155_v34 = vpop.permute.xlu1 %154  ;;  %v153_v35 = vpop.permute.xlu0 %152 }
  0x98   :  { %v200_v36 = vsel %vm198_vm10, %v197_v32, %v155_v34  ;;  %v199_v37 = vsel %vm198_vm10, %v196_v33, %v153_v35  ;;  %vm108_vm10 = vcmask 1022976  }
  0x99   :  { %v203_v38 = vsel %vm201_vm11, %v200_v36, 0.0  ;;  %v202_v39 = vsel %vm201_vm11, %v199_v37, 0.0  ;;  %vm117_vm11 = vcmask 138240  }
  0x9b   :  { %v161_v40 = vpop.permute.xlu1 %160  ;;  %v159_v41 = vpop.permute.xlu0 %158 }
  0x9c   :  { %v206_v42 = vsel %vm204_vm12, %v203_v38, %v161_v40  ;;  %v205_v43 = vsel %vm204_vm12, %v202_v39, %v159_v41  ;;  %vm111_vm12 = vcmask 1039360  }
  0x9d   :  { %v209_v44 = vsel %vm207_vm13, %v206_v42, 0.0  ;;  %v208_v45 = vsel %vm207_vm13, %v205_v43, 0.0  ;;  %vm220_vm13 = vcmask 269312  }
  0x9e   :  { %216 = vrot.lane.b32.xlu1 %v209_v44, %s345_s26  ;;  %212 = vrot.lane.b32.xlu0 %v208_v45, %s345_s26 }
  0x9f   :  { %v167_v46 = vpop.permute.xlu1 %166  ;;  %v165_v47 = vpop.permute.xlu0 %164 }
  0xa2   :  { %218 = vrot.lane.b32.xlu1 %v167_v46, %s345_s26  ;;  %214 = vrot.lane.b32.xlu0 %v165_v47, %s345_s26 }
  0xa3   :  { %v30_v48 = vpop.permute.xlu1 %29  ;;  %v28_v49 = vpop.permute.xlu0 %27 }
  0xa4   :  { %v77_v52 = vsel %vm75_vm14, 0.0, %v30_v48  ;;  %v76_v53 = vsel %vm75_vm14, 0.0, %v28_v49  ;;  %vm229_vm14 = vcmask 400384  }
  0xa5   :  { %v80_v54 = vsel %vm78_vm15, %v77_v52, 0.0  ;;  %v79_v55 = vsel %vm78_vm15, %v76_v53, 0.0  ;;  %vm241_vm15 = vcmask 551936  }
  0xa7   :  { %v36_v50 = vpop.permute.xlu1 %35  ;;  %v34_v51 = vpop.permute.xlu0 %33 }
  0xa8   :  { %v83_v58 = vsel %vm81_vm0, %v80_v54, %v36_v50  ;;  %v82_v59 = vsel %vm81_vm0, %v79_v55, %v34_v51 }
  0xa9   :  { %v86_v60 = vsel %vm84_vm1, %v83_v58, 0.0  ;;  %v85_v61 = vsel %vm84_vm1, %v82_v59, 0.0 }
  0xab   :  { %v42_v56 = vpop.permute.xlu1 %41  ;;  %v40_v57 = vpop.permute.xlu0 %39 }
  0xac   :  { %v89_v0 = vsel %vm87_vm2, %v86_v60, %v42_v56  ;;  %v88_v1 = vsel %vm87_vm2, %v85_v61, %v40_v57 }
  0xad   :  { %v92_v2 = vsel %vm90_vm3, %v89_v0, 0.0  ;;  %v91_v3 = vsel %vm90_vm3, %v88_v1, 0.0 }
  0xaf   :  { %v48_v62 = vpop.permute.xlu1 %47  ;;  %v46_v63 = vpop.permute.xlu0 %45 }
  0xb0   :  { %v95_v6 = vsel %vm93_vm4, %v92_v2, %v48_v62  ;;  %v94_v7 = vsel %vm93_vm4, %v91_v3, %v46_v63 }
  0xb1   :  { %v98_v8 = vsel %vm96_vm5, %v95_v6, 0.0  ;;  %v97_v9 = vsel %vm96_vm5, %v94_v7, 0.0 }
  0xb3   :  { %v54_v4 = vpop.permute.xlu1 %53  ;;  %v52_v5 = vpop.permute.xlu0 %51 }
  0xb4   :  { %v101_v12 = vsel %vm99_vm6, %v98_v8, %v54_v4  ;;  %v100_v13 = vsel %vm99_vm6, %v97_v9, %v52_v5 }
  0xb5   :  { %v104_v14 = vsel %vm102_vm7, %v101_v12, 0.0  ;;  %v103_v15 = vsel %vm102_vm7, %v100_v13, 0.0 }
  0xb7   :  { %v60_v10 = vpop.permute.xlu1 %59  ;;  %v58_v11 = vpop.permute.xlu0 %57 }
  0xb8   :  { %v107_v18 = vsel %vm105_vm8, %v104_v14, %v60_v10  ;;  %v106_v19 = vsel %vm105_vm8, %v103_v15, %v58_v11 }
  0xb9   :  { %v110_v24 = vsel %vm108_vm10, %v107_v18, 0.0  ;;  %v109_v25 = vsel %vm108_vm10, %v106_v19, 0.0 }
  0xbb   :  { %v66_v16 = vpop.permute.xlu1 %65  ;;  %v64_v17 = vpop.permute.xlu0 %63 }
  0xbc   :  { %v116_v22 = vsel %vm114_vm9, %v66_v16, 0.0  ;;  %v115_v23 = vsel %vm114_vm9, %v64_v17, 0.0  ;;  %v113_v30 = vsel %vm111_vm12, %v110_v24, %v66_v16  ;;  %v112_v31 = vsel %vm111_vm12, %v109_v25, %v64_v17 }
  0xbf   :  { %v72_v20 = vpop.permute.xlu1 %71  ;;  %v70_v21 = vpop.permute.xlu0 %69 }
  0xc0   :  { %v119_v26 = vsel %vm117_vm11, %v116_v22, %v72_v20  ;;  %v118_v27 = vsel %vm117_vm11, %v115_v23, %v70_v21 }
 0x110   :  { %v217_v28 = vpop.permute.xlu1 %216  ;;  %v213_v29 = vpop.permute.xlu0 %212 }
 0x111   :  { %v228_v32 = vsel %vm220_vm13, %v119_v26, %v217_v28  ;;  %v227_v33 = vsel %vm220_vm13, %v118_v27, %v213_v29 }
 0x112   :  { %v237_v34 = vcombine.low %v113_v30, %v228_v32  ;;  %v236_v35 = vcombine.low %v112_v31, %v227_v33 }
 0x114   :  { %243 = vst [vmem:[#allocation5 + $0xc] sm:$0xff] %v237_v34  ;;  %240 = vst [vmem:[#allocation5] sm:$0xff] %v236_v35  ;;  %v219_v36 = vpop.permute.xlu1 %218  ;;  %v215_v37 = vpop.permute.xlu0 %214 }
 0x115   :  { %v222_v38 = vsel %vm220_vm13, %v217_v28, %v219_v36  ;;  %v221_v39 = vsel %vm220_vm13, %v213_v29, %v215_v37 }
 0x116   :  { %v231_v40 = vsel %vm229_vm14, %v222_v38, 0.0  ;;  %v230_v41 = vsel %vm229_vm14, %v221_v39, 0.0 }
 0x117   :  { %244 = vst.msk [vmem:[#allocation5 + $0x14] sm:$0xf] %vm241_vm15, %v231_v40  ;;  %242 = vst.msk [vmem:[#allocation5 + $0x8] sm:$0xf] %vm241_vm15, %v230_v41 }
 0x118   :  { %315 = shalt.err (!%p312_p9)
}
 0x119   :  { %s347_s30 = smov 192  }
 0x11a   :  { %256 = dma.vmem_to_hbm [thread:$0]  %s251_s28, 384, %s378_s1, [#allocation4], %s347_s30, %s347_s30, %s335_s0  }
 0x11b   :  { %326 = dma.done.wait [#allocation4], 384  }
 0x11c   :  { %327 = vsyncadd [#allocation4], 4294966912 }
 0x11d   :  { %260 = vsyncpa [#allocation3], 1 }
 0x11e   :  { %261 = vsyncpa [#allocation4], 1 }

</bundles_post_ra>
